<compile_context>
chip_gen: v7x
topology: tpu7x:2x2x1
jax: 0.10.0
libtpu: 0.0.40
codegen_flags: <defaults>
</compile_context>

<pallas_src>
import jax
import jax.numpy as jnp
from jax.experimental import pallas as pl
from jax.experimental.pallas import tpu as pltpu

HIDDEN = 64
_LANE = 128
_VMEM_DATA_BUDGET = 20 * 1024 * 1024   # bytes budgeted for per-step data blocks
_VMEM_LIMIT = 32 * 1024 * 1024         # scoped VMEM limit (safe on v5e/v6e/v7x)
_MAX_TILE = 16384


def _round_up(n, m):
    return ((n + m - 1) // m) * m


def _choose_tile(n_rows, input_dim):
    """Row tile from a VMEM budget, using the lane-padded minor dim.

    Per-row VMEM bytes (minor dims padded to 128 by Mosaic):
      x   : double-buffered bf16 (tile, D)          -> 2 * round_up(D,128) * 2
      out : double-buffered f32  (tile, 1) -> 128   -> 2 * 128 * 4
      h + elementwise temps (f32, 64 -> 128 lanes)  -> ~3 * 128 * 4
    """
    lane_d = _round_up(max(input_dim, 1), _LANE)
    bytes_per_row = 2 * lane_d * 2 + 2 * _LANE * 4 + 3 * _LANE * 4
    tile = _VMEM_DATA_BUDGET // bytes_per_row
    tile = min(tile, _MAX_TILE)
    # Keep >= 2 grid steps when there is enough work so both v7x TensorCores
    # get batch tiles ("parallel" grid axis); harmless on single-TC v5e/v6e.
    half_rows = _round_up(-(-n_rows // 2), _LANE)
    tile = min(tile, max(half_rows, _LANE))
    tile = min(tile, _round_up(n_rows, _LANE))
    return max(_LANE, (tile // _LANE) * _LANE)


def edge_classifier_kernel(x_ref, w1_ref, b1_ref, w2_ref, b2_ref, o_ref):
    x = x_ref[...]                                                # (tile, D) bf16
    # Layer 1: bf16 x bf16 MXU matmul with f32 accumulation, then bias + ReLU.
    h = jnp.dot(x, w1_ref[...], preferred_element_type=jnp.float32)   # (tile, 64) f32
    h = jnp.maximum(h + b1_ref[...], 0.0)
    # Layer 2: VPU multiply + lane reduce (no XLU transpose of h, no tiny MXU op).
    z = jnp.sum(h * w2_ref[...], axis=-1, keepdims=True)              # (tile, 1) f32
    o_ref[...] = jax.nn.sigmoid(z + b2_ref[0, 0])


def edge_classifier(x, w1, b1, w2, b2, *, tile_rows=None):
    """x: (N, D) float. w1: (D, 64); b1: (1, 64); w2: (1, 64) (PyTorch layout); b2: (1, 1)."""
    N, D = x.shape
    if tile_rows is None:
        tile = _choose_tile(N, D)
    else:
        tile = max(_LANE, (int(tile_rows) // _LANE) * _LANE)   # force multiple of 128
        tile = min(tile, _round_up(N, _LANE))
    assert tile % _LANE == 0

    n_pad = _round_up(N, tile)
    x_bf = x.astype(jnp.bfloat16)                              # stream x as bf16
    if n_pad != N:
        x_bf = jnp.pad(x_bf, ((0, n_pad - N), (0, 0)))
    w1_bf = w1.astype(jnp.bfloat16)                            # feed MXU in bf16
    num_tiles = n_pad // tile

    out = pl.pallas_call(
        edge_classifier_kernel,
        out_shape=jax.ShapeDtypeStruct((n_pad, 1), jnp.float32),
        grid=(num_tiles,),
        in_specs=[
            pl.BlockSpec((tile, D), lambda i: (i, 0)),         # streamed, double-buffered
            pl.BlockSpec((D, HIDDEN), lambda i: (0, 0)),       # resident across grid steps
            pl.BlockSpec((1, HIDDEN), lambda i: (0, 0)),
            pl.BlockSpec((1, HIDDEN), lambda i: (0, 0)),
            pl.BlockSpec((1, 1), lambda i: (0, 0),
                         memory_space=pltpu.MemorySpace.SMEM),  # scalar bias in SMEM
        ],
        out_specs=pl.BlockSpec((tile, 1), lambda i: (i, 0)),
        compiler_params=pltpu.CompilerParams(
            dimension_semantics=("parallel",),                 # 2-TC batch split on v7x
            vmem_limit_bytes=_VMEM_LIMIT,
        ),
    )(x_bf, w1_bf, b1, w2, b2)

    return out[:N]


def init_params(key, input_dim, hidden=HIDDEN):
    """Deterministic init mirroring nn.Linear default (uniform +/- 1/sqrt(fan_in))."""
    k1, k2, k3, k4 = jax.random.split(key, 4)
    bound1 = 1.0 / jnp.sqrt(jnp.float32(input_dim))
    bound2 = 1.0 / jnp.sqrt(jnp.float32(hidden))
    w1 = jax.random.uniform(k1, (input_dim, hidden), jnp.float32, -bound1, bound1)  # (in, out)
    b1 = jax.random.uniform(k2, (1, hidden), jnp.float32, -bound1, bound1)
    w2 = jax.random.uniform(k3, (1, hidden), jnp.float32, -bound2, bound2)          # PyTorch (out, in)
    b2 = jax.random.uniform(k4, (1, 1), jnp.float32, -bound2, bound2)
    return w1, b1, w2, b2


def reference(x, w1, b1, w2, b2):
    h = jnp.maximum(x @ w1 + b1, 0.0)
    return jax.nn.sigmoid(h @ w2.T + b2)


if __name__ == "__main__":
    key = jax.random.PRNGKey(0)
    k_x, k_p, k_x2 = jax.random.split(key, 3)

    input_dim = 32
    w1, b1, w2, b2 = init_params(k_p, input_dim)

    # Small case: single tile (8 rows, padded to 128 internally), auto tile size.
    x_small = jax.random.normal(k_x, (8, input_dim), jnp.float32)
    out_small = jax.block_until_ready(edge_classifier(x_small, w1, b1, w2, b2))
    ref_small = reference(x_small, w1, b1, w2, b2)
    assert out_small.shape == (8, 1)
    # bf16 streaming of x / w1: loosen parity tolerance vs. the f32 reference.
    assert jnp.allclose(out_small, ref_small, atol=2e-2, rtol=2e-2)

    # Multi-tile case: exercises the batch grid, resident weights and tail padding.
    x_big = jax.random.normal(k_x2, (300, input_dim), jnp.float32)
    out_big = jax.block_until_ready(edge_classifier(x_big, w1, b1, w2, b2, tile_rows=128))
    ref_big = reference(x_big, w1, b1, w2, b2)
    assert out_big.shape == (300, 1)
    assert jnp.allclose(out_big, ref_big, atol=2e-2, rtol=2e-2)

    # Auto-tiled multi-row case as well (covers the VMEM-budget tile path with >1 step).
    out_auto = jax.block_until_ready(edge_classifier(x_big, w1, b1, w2, b2))
    assert out_auto.shape == (300, 1)
    assert jnp.allclose(out_auto, ref_big, atol=2e-2, rtol=2e-2)

    print("KERNEL_OK")
</pallas_src>

<mosaic_0001>
module attributes {stable_mosaic.version = 11 : i64} {
  func.func @edge_classifier_kernel(%arg0: i32, %arg1: memref<128x32xbf16, #tpu.memory_space<vmem>>, %arg2: memref<32x64xbf16, #tpu.memory_space<vmem>>, %arg3: memref<1x64xf32, #tpu.memory_space<vmem>>, %arg4: memref<1x64xf32, #tpu.memory_space<vmem>>, %arg5: memref<1x1xf32, #tpu.memory_space<smem>>, %arg6: memref<128x1xf32, #tpu.memory_space<vmem>>) attributes {dimension_semantics = [#tpu.dimension_semantics<parallel>], iteration_bounds = array<i64: 1>, scalar_prefetch = 0 : i64, scratch_operands = 0 : i64, tpu.core_type = #tpu.core_type<tc>, window_params = [{transform_indices = @transform_0, window_bounds = array<i64: 128, 32>}, {pipeline_mode = #tpu.pipeline_mode<synchronous>, transform_indices = @transform_1, window_bounds = array<i64: 32, 64>}, {pipeline_mode = #tpu.pipeline_mode<synchronous>, transform_indices = @transform_2, window_bounds = array<i64: 1, 64>}, {pipeline_mode = #tpu.pipeline_mode<synchronous>, transform_indices = @transform_3, window_bounds = array<i64: 1, 64>}, {transform_indices = @transform_4, window_bounds = array<i64: 1, 1>}, {transform_indices = @transform_5, window_bounds = array<i64: 128, 1>}]} {
    %c0 = arith.constant 0 : index
    %c0_0 = arith.constant 0 : index
    %0 = vector.load %arg1[%c0, %c0_0] : memref<128x32xbf16, #tpu.memory_space<vmem>>, vector<128x32xbf16>
    %c0_1 = arith.constant 0 : index
    %c0_2 = arith.constant 0 : index
    %1 = vector.load %arg2[%c0_1, %c0_2] : memref<32x64xbf16, #tpu.memory_space<vmem>>, vector<32x64xbf16>
    %cst = arith.constant dense<0.000000e+00> : vector<128x64xf32>
    %2 = tpu.matmul %0, %1, %cst {dimension_numbers = #tpu.dot_dimension_numbers<[1], [0], [0], [1], [0, 0, 1, 1], [], []>} : vector<128x32xbf16>, vector<32x64xbf16>, vector<128x64xf32> -> vector<128x64xf32>
    %c0_3 = arith.constant 0 : index
    %c0_4 = arith.constant 0 : index
    %3 = vector.load %arg3[%c0_3, %c0_4] : memref<1x64xf32, #tpu.memory_space<vmem>>, vector<1x64xf32>
    %4 = vector.broadcast %3 : vector<1x64xf32> to vector<128x64xf32>
    %5 = arith.addf %2, %4 : vector<128x64xf32>
    %cst_5 = arith.constant 0.000000e+00 : f32
    %6 = vector.broadcast %cst_5 : f32 to vector<128x64xf32>
    %7 = arith.maximumf %5, %6 : vector<128x64xf32>
    %c0_6 = arith.constant 0 : index
    %c0_7 = arith.constant 0 : index
    %8 = vector.load %arg4[%c0_6, %c0_7] : memref<1x64xf32, #tpu.memory_space<vmem>>, vector<1x64xf32>
    %9 = vector.broadcast %8 : vector<1x64xf32> to vector<128x64xf32>
    %10 = arith.mulf %7, %9 : vector<128x64xf32>
    %cst_8 = arith.constant dense<0.000000e+00> : vector<128xf32>
    %11 = vector.multi_reduction <add>, %10, %cst_8 [1] : vector<128x64xf32> to vector<128xf32>
    %12 = vector.shape_cast %11 : vector<128xf32> to vector<128x1xf32>
    %c0_9 = arith.constant 0 : index
    %c0_10 = arith.constant 0 : index
    %13 = memref.load %arg5[%c0_9, %c0_10] : memref<1x1xf32, #tpu.memory_space<smem>>
    %14 = vector.broadcast %13 : f32 to vector<128x1xf32>
    %15 = arith.addf %12, %14 : vector<128x1xf32>
    %16 = arith.negf %15 : vector<128x1xf32>
    %17 = math.exp %16 : vector<128x1xf32>
    %cst_11 = arith.constant 1.000000e+00 : f32
    %18 = vector.broadcast %cst_11 : f32 to vector<128x1xf32>
    %19 = arith.addf %18, %17 : vector<128x1xf32>
    %20 = arith.divf %18, %19 : vector<128x1xf32>
    %c0_12 = arith.constant 0 : index
    %c0_13 = arith.constant 0 : index
    %21 = vector.load %arg6[%c0_12, %c0_13] : memref<128x1xf32, #tpu.memory_space<vmem>>, vector<128x1xf32>
    tpu.vector_store %arg6[%c0_12, %c0_13], %20 {strides = array<i32>} : memref<128x1xf32, #tpu.memory_space<vmem>>, vector<128x1xf32>,
    return
  }
  func.func @transform_0(%arg0: i32) -> (i32, i32) {
    %c0_i32 = arith.constant 0 : i32
    %c0_i32_0 = arith.constant 0 : i32
    return %arg0, %c0_i32 : i32, i32
  }
  func.func @transform_1(%arg0: i32) -> (i32, i32) {
    %c0_i32 = arith.constant 0 : i32
    %c0_i32_0 = arith.constant 0 : i32
    %c0_i32_1 = arith.constant 0 : i32
    return %c0_i32, %c0_i32_0 : i32, i32
  }
  func.func @transform_2(%arg0: i32) -> (i32, i32) {
    %c0_i32 = arith.constant 0 : i32
    %c0_i32_0 = arith.constant 0 : i32
    %c0_i32_1 = arith.constant 0 : i32
    return %c0_i32, %c0_i32_0 : i32, i32
  }
  func.func @transform_3(%arg0: i32) -> (i32, i32) {
    %c0_i32 = arith.constant 0 : i32
    %c0_i32_0 = arith.constant 0 : i32
    %c0_i32_1 = arith.constant 0 : i32
    return %c0_i32, %c0_i32_0 : i32, i32
  }
  func.func @transform_4(%arg0: i32) -> (i32, i32) {
    %c0_i32 = arith.constant 0 : i32
    %c0_i32_0 = arith.constant 0 : i32
    %c0_i32_1 = arith.constant 0 : i32
    return %c0_i32, %c0_i32_0 : i32, i32
  }
  func.func @transform_5(%arg0: i32) -> (i32, i32) {
    %c0_i32 = arith.constant 0 : i32
    %c0_i32_0 = arith.constant 0 : i32
    return %arg0, %c0_i32 : i32, i32
  }
}

</mosaic_0001>

<bundles_post_ra>
// kernel: tpu_custom_call.1
= control target key start
LH: loop header
LB: loop body
LE: loop exit
PB: predicated region body
PF: predicated region fallthrough
CT: control target
= control target key end

     0   :  { %vm101_vm0 = vcmask 261120   ;;  %vm262_vm1 = vcmask 523264   ;;  %vm425_vm2 = vcmask 7168   ;;  %s801_s1 = inlined_call_operand.vmem [shape: bf16[32,64], index: 1, kind: input, shape index: {}]   ;;  %s802_s0 = inlined_call_operand.vmem [shape: bf16[128,32], index: 0, kind: input, shape index: {}]   ;;  %s803_s2 = inlined_call_operand.vmem [shape: f32[1,64], index: 2, kind: input, shape index: {}]   ;;  %s804_s3 = inlined_call_operand.vmem [shape: f32[1,64], index: 3, kind: input, shape index: {}]   ;;  %s805_s4 = inlined_call_operand.<no memory space> [shape: f32[1,1], index: 4, kind: input, shape index: {}]   ;;  %s806_s5 = inlined_call_operand.vmem [shape: f32[128,1], index: 5, kind: output, shape index: {}]  }
   0x1   :  { %v516_v0 = vld [vmem:[%s801_s1] sm:$0xff]   ;;  %v517_v1 = vld [vmem:[%s801_s1 + $0x8] sm:$0xff]   ;;  %v522_v6 = vld [vmem:[%s802_s0 + $0x10] sm:$0xff]  }
   0x2   :  { %492 = vmatprep.subr.bf16.mxu0 %v516_v0  ;;  %512 = vmatprep.subr.bf16.mxu1 %v516_v0  ;;  %v518_v2 = vld [vmem:[%s802_s0] sm:$0xff]   ;;  %v520_v4 = vld [vmem:[%s802_s0 + $0x8] sm:$0xff]   ;;  %v524_v7 = vld [vmem:[%s802_s0 + $0x30] sm:$0xff]  }
   0x3   :  { %493 = vmatpush3.bf16.msra.mxu0 %v516_v0  ;;  %514 = vmatpush3.bf16.msra.mxu1 %v516_v0  ;;  %v519_v3 = vld [vmem:[%s802_s0 + $0x20] sm:$0xff]   ;;  %v521_v5 = vld [vmem:[%s802_s0 + $0x28] sm:$0xff]   ;;  %v523_v8 = vld [vmem:[%s802_s0 + $0x18] sm:$0xff]  }
   0x4   :  { %494 = vmatprep.subr.bf16.mxu0 %v517_v1  ;;  %513 = vmatprep.subr.bf16.mxu1 %v517_v1  ;;  %v525_v9 = vld [vmem:[%s802_s0 + $0x38] sm:$0xff]   ;;  %v661_v10 = vld [vmem:[%s803_s2] ss:$0 sm:$0xff] }
   0x5   :  { %496 = vmatprep.mubr.msk.bf16.mxu0 %vm101_vm0, %v518_v2  ;;  %504 = vmatprep.mubr.msk.bf16.mxu1 %vm101_vm0, %v519_v3  ;;  %v670_v21 = vld [vmem:[%s804_s3] ss:$0 sm:$0xff] }
   0x7   :  { %495 = vmatpush3.bf16.msra.mxu0 %v517_v1  ;;  %515 = vmatpush3.bf16.msra.mxu1 %v517_v1 }
   0xa   :  { %497 = vmatmul.mubr.msk.bf16.vlgmr.msra.gmra.mrb[0].mxu0 %vm101_vm0, %v520_v4  ;;  %505 = vmatmul.mubr.msk.bf16.vlgmr.msra.gmra.mrb[0].mxu1 %vm101_vm0, %v521_v5 }
   0xb   :  { %500 = vmatprep.mubr.msk.bf16.mxu0 %vm101_vm0, %v522_v6  ;;  %508 = vmatprep.mubr.msk.bf16.mxu1 %vm101_vm0, %v524_v7 }
  0x12   :  { %501 = vmatmul.mubr.msk.bf16.gmra.mrb[4].mxu0 %vm101_vm0, %v523_v8  ;;  %509 = vmatmul.mubr.msk.bf16.gmra.mrb[4].mxu1 %vm101_vm0, %v525_v9 }
  0xdd   :  { %v498_v11 = vpop.f32.mrb[0].mxu0  ;;  %v506_v12 = vpop.f32.mrb[0].mxu1 }
  0xde   :  { %v169_v13 = vadd.f32 %v498_v11, %v661_v10  ;;  %v201_v14 = vadd.f32 %v506_v12, %v661_v10  ;;  %v160_v15 = vpop.f32.mrb[1].mxu0  ;;  %v192_v16 = vpop.f32.mrb[1].mxu1 }
  0xdf   :  { %v161_v17 = vadd.f32 %v661_v10, %v160_v15  ;;  %v193_v18 = vadd.f32 %v661_v10, %v192_v16  ;;  %v499_v19 = vpop.f32.mrb[2].mxu0  ;;  %v507_v20 = vpop.f32.mrb[2].mxu1 }
  0xe0   :  { %v225_v22 = vmax.f32 %v169_v13, 0.0  ;;  %v233_v23 = vmax.f32 %v201_v14, 0.0  ;;  %v172_v24 = vadd.f32 %v499_v19, %v661_v10  ;;  %v204_v25 = vadd.f32 %v507_v20, %v661_v10  ;;  %v163_v26 = vpop.f32.mrb[3].mxu0  ;;  %v195_v27 = vpop.f32.mrb[3].mxu1 }
  0xe1   :  { %v223_v28 = vmax.f32 %v161_v17, 0.0  ;;  %v231_v32 = vmax.f32 %v193_v18, 0.0  ;;  %v164_v34 = vadd.f32 %v661_v10, %v163_v26  ;;  %v196_v35 = vadd.f32 %v661_v10, %v195_v27 }
  0xe2   :  { %v226_v29 = vmax.f32 %v172_v24, 0.0  ;;  %v256_v30 = vmul.f32 %v670_v21, %v233_v23  ;;  %v248_v31 = vmul.f32 %v670_v21, %v225_v22  ;;  %v234_v33 = vmax.f32 %v204_v25, 0.0 }
  0xe3   :  { %v246_v39 = vmul.f32 %v670_v21, %v223_v28  ;;  %v224_v44 = vmax.f32 %v164_v34, 0.0  ;;  %v232_v45 = vmax.f32 %v196_v35, 0.0  ;;  %v254_v48 = vmul.f32 %v670_v21, %v231_v32 }
  0xe4   :  { %v293_v36 = vsel %vm262_vm1, %v256_v30, 0.0  ;;  %v269_v37 = vsel %vm262_vm1, %v248_v31, 0.0  ;;  %v249_v38 = vmul.f32 %v670_v21, %v226_v29  ;;  %v257_v47 = vmul.f32 %v670_v21, %v234_v33 }
  0xe5   :  { %294 = vadd.xlane.f32.xlu0 %v293_v36  ;;  %270 = vadd.xlane.f32.xlu1 %v269_v37  ;;  %v502_v40 = vpop.f32.mrb[4].mxu0  ;;  %v510_v41 = vpop.f32.mrb[4].mxu1  ;;  %v263_v52 = vsel %vm262_vm1, %v246_v39, 0.0  ;;  %v287_v57 = vsel %vm262_vm1, %v254_v48, 0.0  ;;  %v255_v58 = vmul.f32 %v670_v21, %v232_v45  ;;  %v247_v59 = vmul.f32 %v670_v21, %v224_v44 }
  0xe6   :  { %v176_v42 = vpop.f32.mrb[5].mxu0  ;;  %v208_v43 = vpop.f32.mrb[5].mxu1  ;;  %v185_v50 = vadd.f32 %v502_v40, %v661_v10  ;;  %v272_v51 = vsel %vm262_vm1, %v249_v38, 0.0  ;;  %v296_v56 = vsel %vm262_vm1, %v257_v47, 0.0  ;;  %v217_v8 = vadd.f32 %v510_v41, %v661_v10 }
  0xe7   :  { %v503_v46 = vpop.f32.mrb[6].mxu0  ;;  %v511_v49 = vpop.f32.mrb[6].mxu1  ;;  %v177_v61 = vadd.f32 %v661_v10, %v176_v42  ;;  %v209_v0 = vadd.f32 %v661_v10, %v208_v43  ;;  %v290_v1 = vsel %vm262_vm1, %v255_v58, 0.0  ;;  %v266_v2 = vsel %vm262_vm1, %v247_v59, 0.0 }
  0xe8   :  { %v188_v53 = vadd.f32 %v503_v46, %v661_v10  ;;  %v179_v54 = vpop.f32.mrb[7].mxu0  ;;  %v211_v55 = vpop.f32.mrb[7].mxu1  ;;  %v229_v60 = vmax.f32 %v185_v50, 0.0  ;;  %v220_v11 = vadd.f32 %v511_v49, %v661_v10  ;;  %v237_v17 = vmax.f32 %v217_v8, 0.0 }
  0xe9   :  { %273 = vadd.xlane.f32.xlu1 %v272_v51  ;;  %264 = vadd.xlane.f32.xlu0 %v263_v52  ;;  %v180_v63 = vadd.f32 %v661_v10, %v179_v54  ;;  %v212_v3 = vadd.f32 %v661_v10, %v211_v55  ;;  %v227_v4 = vmax.f32 %v177_v61, 0.0  ;;  %v235_v9 = vmax.f32 %v209_v0, 0.0 }
  0xea   :  { %v230_v62 = vmax.f32 %v188_v53, 0.0  ;;  %v252_v7 = vmul.f32 %v670_v21, %v229_v60  ;;  %v238_v18 = vmax.f32 %v220_v11, 0.0  ;;  %v260_v26 = vmul.f32 %v670_v21, %v237_v17 }
  0xeb   :  { %v228_v5 = vmax.f32 %v180_v63, 0.0  ;;  %v236_v12 = vmax.f32 %v212_v3, 0.0  ;;  %v250_v16 = vmul.f32 %v670_v21, %v227_v4  ;;  %v258_v10 = vmul.f32 %v670_v21, %v235_v9 }
  0xec   :  { %v253_v6 = vmul.f32 %v670_v21, %v230_v62  ;;  %v281_v14 = vsel %vm262_vm1, %v252_v7, 0.0  ;;  %v261_v25 = vmul.f32 %v670_v21, %v238_v18  ;;  %v305_v28 = vsel %vm262_vm1, %v260_v26, 0.0 }
  0xed   :  { %297 = vadd.xlane.f32.xlu1 %v296_v56  ;;  %288 = vadd.xlane.f32.xlu0 %v287_v57  ;;  %v251_v15 = vmul.f32 %v670_v21, %v228_v5  ;;  %v275_v20 = vsel %vm262_vm1, %v250_v16, 0.0  ;;  %v259_v22 = vmul.f32 %v670_v21, %v236_v12  ;;  %v299_v24 = vsel %vm262_vm1, %v258_v10, 0.0 }
  0xee   :  { %v284_v13 = vsel %vm262_vm1, %v253_v6, 0.0  ;;  %v308_v27 = vsel %vm262_vm1, %v261_v25, 0.0  ;;  %v719_v29 = vstv %s805_s4 }
  0xef   :  { %v278_v19 = vsel %vm262_vm1, %v251_v15, 0.0  ;;  %v302_v23 = vsel %vm262_vm1, %v259_v22, 0.0 }
  0xf1   :  { %291 = vadd.xlane.f32.xlu1 %v290_v1  ;;  %267 = vadd.xlane.f32.xlu0 %v266_v2 }
  0xf5   :  { %285 = vadd.xlane.f32.xlu1 %v284_v13  ;;  %282 = vadd.xlane.f32.xlu0 %v281_v14 }
  0xf9   :  { %279 = vadd.xlane.f32.xlu1 %v278_v19  ;;  %276 = vadd.xlane.f32.xlu0 %v275_v20 }
  0xfd   :  { %303 = vadd.xlane.f32.xlu1 %v302_v23  ;;  %300 = vadd.xlane.f32.xlu0 %v299_v24 }
 0x101   :  { %309 = vadd.xlane.f32.xlu1 %v308_v27  ;;  %306 = vadd.xlane.f32.xlu0 %v305_v28 }
 0x172   :  { %v295_v30 = vpop.xlane.xlu0 %294  ;;  %v271_v31 = vpop.xlane.xlu1 %270 }
 0x173   :  { %v323_v32 = vadd.f32 %v719_v29, %v295_v30  ;;  %v315_v33 = vadd.f32 %v719_v29, %v271_v31 }
 0x175   :  { %v476_v21 = vmul.f32 -1.442695, %v323_v32  ;;  %v468_v34 = vmul.f32 -1.442695, %v315_v33 }
 0x176   :  { %v274_v35 = vpop.xlane.xlu1 %273  ;;  %v265_v36 = vpop.xlane.xlu0 %264 }
 0x177   :  { %526 = vpow2.f32 %v476_v21  ;;  %v316_v37 = vadd.f32 %v719_v29, %v274_v35  ;;  %v313_v38 = vadd.f32 %v719_v29, %v265_v36 }
 0x178   :  { %528 = vpow2.f32 %v468_v34 }
 0x179   :  { %v469_v39 = vmul.f32 -1.442695, %v316_v37  ;;  %v466_v40 = vmul.f32 -1.442695, %v313_v38 }
 0x17a   :  { %v298_v41 = vpop.xlane.xlu1 %297  ;;  %v289_v42 = vpop.xlane.xlu0 %288 }
 0x17b   :  { %530 = vpow2.f32 %v469_v39  ;;  %v324_v43 = vadd.f32 %v719_v29, %v298_v41  ;;  %v321_v44 = vadd.f32 %v719_v29, %v289_v42 }
 0x17c   :  { %532 = vpow2.f32 %v466_v40 }
 0x17d   :  { %v477_v45 = vmul.f32 -1.442695, %v324_v43  ;;  %v474_v46 = vmul.f32 -1.442695, %v321_v44 }
 0x17e   :  { %v292_v47 = vpop.xlane.xlu1 %291  ;;  %v268_v48 = vpop.xlane.xlu0 %267 }
 0x17f   :  { %534 = vpow2.f32 %v477_v45  ;;  %v322_v49 = vadd.f32 %v719_v29, %v292_v47  ;;  %v314_v50 = vadd.f32 %v719_v29, %v268_v48 }
 0x180   :  { %536 = vpow2.f32 %v474_v46 }
 0x181   :  { %v527_v51 = vpop.eup %526  ;;  %v475_v52 = vmul.f32 -1.442695, %v322_v49  ;;  %v467_v55 = vmul.f32 -1.442695, %v314_v50 }
 0x182   :  { %v529_v53 = vpop.eup %528  ;;  %v387_v54 = vadd.f32 1.0, %v527_v51  ;;  %v286_v56 = vpop.xlane.xlu1 %285 }
 0x183   :  { %v283_v57 = vpop.xlane.xlu0 %282  ;;  %v379_v58 = vadd.f32 1.0, %v529_v53  ;;  %538 = vpow2.f32 %v475_v52  ;;  %v320_v59 = vadd.f32 %v719_v29, %v286_v56 }
 0x184   :  { %v319_v60 = vadd.f32 %v719_v29, %v283_v57  ;;  %540 = vrcp.f32 %v387_v54 }
 0x185   :  { %v531_v61 = vpop.eup %530  ;;  %542 = vrcp.f32 %v379_v58  ;;  %v473_v62 = vmul.f32 -1.442695, %v320_v59 }
 0x186   :  { %v533_v63 = vpop.eup %532  ;;  %v380_v0 = vadd.f32 1.0, %v531_v61  ;;  %544 = vpow2.f32 %v467_v55  ;;  %v472_v1 = vmul.f32 -1.442695, %v319_v60  ;;  %v280_v2 = vpop.xlane.xlu1 %279 }
 0x187   :  { %v277_v3 = vpop.xlane.xlu0 %276  ;;  %v377_v4 = vadd.f32 1.0, %v533_v63  ;;  %546 = vpow2.f32 %v473_v62  ;;  %v318_v5 = vadd.f32 %v719_v29, %v280_v2 }
 0x188   :  { %v317_v6 = vadd.f32 %v719_v29, %v277_v3  ;;  %548 = vrcp.f32 %v380_v0 }
 0x189   :  { %v535_v7 = vpop.eup %534  ;;  %550 = vrcp.f32 %v377_v4  ;;  %v471_v8 = vmul.f32 -1.442695, %v318_v5 }
 0x18a   :  { %v537_v9 = vpop.eup %536  ;;  %v388_v11 = vadd.f32 1.0, %v535_v7  ;;  %552 = vpow2.f32 %v472_v1  ;;  %v470_v12 = vmul.f32 -1.442695, %v317_v6  ;;  %v304_v13 = vpop.xlane.xlu1 %303 }
 0x18b   :  { %v301_v14 = vpop.xlane.xlu0 %300  ;;  %v385_v15 = vadd.f32 1.0, %v537_v9  ;;  %554 = vpow2.f32 %v471_v8  ;;  %v326_v16 = vadd.f32 %v719_v29, %v304_v13 }
 0x18c   :  { %v325_v17 = vadd.f32 %v719_v29, %v301_v14  ;;  %556 = vrcp.f32 %v388_v11 }
 0x18d   :  { %v539_v18 = vpop.eup %538  ;;  %558 = vrcp.f32 %v385_v15  ;;  %v479_v19 = vmul.f32 -1.442695, %v326_v16 }
 0x18e   :  { %v478_v20 = vmul.f32 -1.442695, %v325_v17  ;;  %v541_v22 = vpop.eup %540  ;;  %v386_v10 = vadd.f32 1.0, %v539_v18  ;;  %560 = vpow2.f32 %v470_v12  ;;  %v310_v23 = vpop.xlane.xlu1 %309 }
 0x18f   :  { %v307_v24 = vpop.xlane.xlu0 %306  ;;  %v543_v25 = vpop.eup %542  ;;  %436 = vst.msk [vmem:[%s806_s5 + $0x50] sm:$0xff] %vm425_vm2, %v541_v22  ;;  %562 = vpow2.f32 %v479_v19  ;;  %v328_v26 = vadd.f32 %v719_v29, %v310_v23 }
 0x190   :  { %v327_v27 = vadd.f32 %v719_v29, %v307_v24  ;;  %v545_v28 = vpop.eup %544  ;;  %428 = vst.msk [vmem:[%s806_s5 + $0x10] sm:$0xff] %vm425_vm2, %v543_v25  ;;  %564 = vrcp.f32 %v386_v10 }
 0x191   :  { %v547_v30 = vpop.eup %546  ;;  %v378_v31 = vadd.f32 1.0, %v545_v28  ;;  %566 = vpow2.f32 %v478_v20  ;;  %v481_v32 = vmul.f32 -1.442695, %v328_v26 }
 0x192   :  { %v549_v33 = vpop.eup %548  ;;  %v384_v21 = vadd.f32 1.0, %v547_v30  ;;  %v480_v34 = vmul.f32 -1.442695, %v327_v27 }
 0x193   :  { %v551_v35 = vpop.eup %550  ;;  %429 = vst.msk [vmem:[%s806_s5 + $0x18] sm:$0xff] %vm425_vm2, %v549_v33  ;;  %568 = vrcp.f32 %v378_v31 }
 0x194   :  { %v553_v29 = vpop.eup %552  ;;  %426 = vst.msk [vmem:[%s806_s5] sm:$0xff] %vm425_vm2, %v551_v35  ;;  %570 = vrcp.f32 %v384_v21 }
 0x195   :  { %v555_v36 = vpop.eup %554  ;;  %v383_v37 = vadd.f32 1.0, %v553_v29  ;;  %572 = vpow2.f32 %v481_v32 }
 0x196   :  { %v557_v38 = vpop.eup %556  ;;  %v382_v39 = vadd.f32 1.0, %v555_v36  ;;  %574 = vpow2.f32 %v480_v34 }
 0x197   :  { %v559_v40 = vpop.eup %558  ;;  %437 = vst.msk [vmem:[%s806_s5 + $0x58] sm:$0xff] %vm425_vm2, %v557_v38  ;;  %576 = vrcp.f32 %v383_v37 }
 0x198   :  { %v561_v41 = vpop.eup %560  ;;  %434 = vst.msk [vmem:[%s806_s5 + $0x40] sm:$0xff] %vm425_vm2, %v559_v40  ;;  %578 = vrcp.f32 %v382_v39 }
 0x199   :  { %v563_v42 = vpop.eup %562  ;;  %v381_v43 = vadd.f32 1.0, %v561_v41 }
 0x19a   :  { %v565_v44 = vpop.eup %564  ;;  %v390_v45 = vadd.f32 1.0, %v563_v42 }
 0x19b   :  { %v567_v46 = vpop.eup %566  ;;  %435 = vst.msk [vmem:[%s806_s5 + $0x48] sm:$0xff] %vm425_vm2, %v565_v44  ;;  %580 = vrcp.f32 %v381_v43 }
 0x19c   :  { %582 = vrcp.f32 %v390_v45  ;;  %v389_v47 = vadd.f32 1.0, %v567_v46 }
 0x19d   :  { %v569_v48 = vpop.eup %568 }
 0x19e   :  { %v571_v49 = vpop.eup %570  ;;  %427 = vst.msk [vmem:[%s806_s5 + $0x8] sm:$0xff] %vm425_vm2, %v569_v48  ;;  %584 = vrcp.f32 %v389_v47 }
 0x19f   :  { %v573_v50 = vpop.eup %572  ;;  %433 = vst.msk [vmem:[%s806_s5 + $0x38] sm:$0xff] %vm425_vm2, %v571_v49 }
 0x1a0   :  { %v575_v51 = vpop.eup %574  ;;  %v392_v52 = vadd.f32 1.0, %v573_v50 }
 0x1a1   :  { %v577_v53 = vpop.eup %576  ;;  %v391_v54 = vadd.f32 1.0, %v575_v51 }
 0x1a2   :  { %v579_v55 = vpop.eup %578  ;;  %432 = vst.msk [vmem:[%s806_s5 + $0x30] sm:$0xff] %vm425_vm2, %v577_v53  ;;  %586 = vrcp.f32 %v392_v52 }
 0x1a3   :  { %431 = vst.msk [vmem:[%s806_s5 + $0x28] sm:$0xff] %vm425_vm2, %v579_v55  ;;  %588 = vrcp.f32 %v391_v54 }
 0x1a5   :  { %v581_v56 = vpop.eup %580 }
 0x1a6   :  { %v583_v57 = vpop.eup %582  ;;  %430 = vst.msk [vmem:[%s806_s5 + $0x20] sm:$0xff] %vm425_vm2, %v581_v56 }
 0x1a7   :  { %439 = vst.msk [vmem:[%s806_s5 + $0x68] sm:$0xff] %vm425_vm2, %v583_v57 }
 0x1a8   :  { %v585_v58 = vpop.eup %584 }
 0x1a9   :  { %438 = vst.msk [vmem:[%s806_s5 + $0x60] sm:$0xff] %vm425_vm2, %v585_v58 }
 0x1ac   :  { %v587_v59 = vpop.eup %586 }
 0x1ad   :  { %v589_v60 = vpop.eup %588  ;;  %441 = vst.msk [vmem:[%s806_s5 + $0x78] sm:$0xff] %vm425_vm2, %v587_v59 }
 0x1ae   :  { %440 = vst.msk [vmem:[%s806_s5 + $0x70] sm:$0xff] %vm425_vm2, %v589_v60 }

</bundles_post_ra>
